<compile_context>
chip_gen: v7x
topology: tpu7x:2x2x1
jax: 0.10.0
libtpu: 0.0.40
codegen_flags: <defaults>
</compile_context>

<pallas_src>
import functools

import jax
import jax.numpy as jnp
from jax import lax
from jax.experimental import pallas as pl
from jax.experimental.pallas import tpu as pltpu  # noqa: F401  (TPU backend)

_LANE = 128        # TPU lane width; each head's output dim is padded to this
_NEG_BIG = -1e30   # bias on padded cluster lanes -> exp() underflows to exactly 0


def _fused_projector_kernel(h_ref, w1_ref, b1_ref, w2_ref, b2_ref, out_ref):
    """Both projector heads for both views in one pass.

    out_ref column layout: [0:128)   L2-normalized instance features (F valid cols)
                           [128:256) cluster softmax probabilities   (C valid cols)
    """
    h = h_ref[...]                                                    # [2B, H] f32

    # ---- layer 1 (both heads fused): [2B, H] @ [H, 2H], bias, ReLU
    a = jnp.dot(h, w1_ref[...], preferred_element_type=jnp.float32) + b1_ref[...]
    a = jnp.maximum(a, 0.0)                                           # [2B, 2H]

    # ---- layer 2 (block-diagonal fused): [2B, 2H] @ [2H, 256], bias
    y = jnp.dot(a, w2_ref[...], preferred_element_type=jnp.float32) + b2_ref[...]

    z = y[:, :_LANE]          # instance head; padded lanes are exactly 0
    logits = y[:, _LANE:]     # cluster head; padded lanes are ~ -1e30

    # L2 normalize: torch.nn.functional.normalize == z / max(||z||, 1e-12)
    #            == z * rsqrt(max(sum(z^2), 1e-24))   (EUP rsqrt, no divide)
    sumsq = jnp.sum(z * z, axis=1, keepdims=True)
    z = z * lax.rsqrt(jnp.maximum(sumsq, 1e-24))

    # softmax over the C valid lanes (pad lanes: exp(-1e30 - m) == 0)
    m = jnp.max(logits, axis=1, keepdims=True)
    e = jnp.exp(logits - m)
    c = e * pl.reciprocal(jnp.sum(e, axis=1, keepdims=True), approx=True)

    out_ref[:, :_LANE] = z
    out_ref[:, _LANE:] = c


def _full_spec(shape):
    # tiny problem: one grid point, full-array blocks resident in VMEM
    return pl.BlockSpec(shape, lambda: tuple(0 for _ in shape))


def fuse_params(params):
    """Fold the four nn.Linear layers into lane-dense fused matrices (done once)."""
    H = params["w1i"].shape[0]

    w1 = jnp.concatenate([params["w1i"], params["w1c"]], axis=1)       # [H, 2H]
    b1 = jnp.concatenate([params["b1i"], params["b1c"]], axis=1)       # [1, 2H]

    def pad_cols(w, width, fill=0.0):
        return jnp.pad(w, ((0, 0), (0, width - w.shape[1])), constant_values=fill)

    w2i = pad_cols(params["w2i"], _LANE)                               # [H, 128]
    w2c = pad_cols(params["w2c"], _LANE)                               # [H, 128]
    zeros = jnp.zeros((H, _LANE), jnp.float32)
    # block-diagonal: one matmul serves both heads (their layer-2 inputs differ)
    w2 = jnp.concatenate(
        [jnp.concatenate([w2i, zeros], axis=1),
         jnp.concatenate([zeros, w2c], axis=1)], axis=0)               # [2H, 256]

    b2i = pad_cols(params["b2i"], _LANE, 0.0)        # pad z lanes with 0 (norm-safe)
    b2c = pad_cols(params["b2c"], _LANE, _NEG_BIG)   # pad c lanes with -1e30 (softmax-safe)
    b2 = jnp.concatenate([b2i, b2c], axis=1)                           # [1, 256]

    return {"w1": w1, "b1": b1, "w2": w2, "b2": b2}


@functools.partial(jax.jit, static_argnames=("feature_dim", "class_num"))
def network_forward(h_i, h_j, fused, *, feature_dim, class_num):
    """Equivalent of Network.forward after the (external) BERT encoder."""
    B, H = h_i.shape
    h = jnp.concatenate([h_i, h_j], axis=0)                            # [2B, H]
    M = 2 * B
    args = (h, fused["w1"], fused["b1"], fused["w2"], fused["b2"])

    flops = 2 * M * H * (2 * H) + 2 * M * (2 * H) * (2 * _LANE)
    bytes_accessed = 4 * (h.size + fused["w1"].size + fused["b1"].size
                          + fused["w2"].size + fused["b2"].size + M * 2 * _LANE)
    out = pl.pallas_call(
        _fused_projector_kernel,
        out_shape=jax.ShapeDtypeStruct((M, 2 * _LANE), jnp.float32),
        in_specs=[_full_spec(a.shape) for a in args],
        out_specs=_full_spec((M, 2 * _LANE)),
        cost_estimate=pl.CostEstimate(flops=flops,
                                      transcendentals=M * _LANE + 2 * M,
                                      bytes_accessed=bytes_accessed),
    )(*args)

    z = out[:, :feature_dim]
    c = out[:, _LANE:_LANE + class_num]
    return z[:B], z[B:], c[:B], c[B:]                                  # z_i, z_j, c_i, c_j


def _reference(h, params):
    hi = jnp.maximum(h @ params["w1i"] + params["b1i"], 0.0)
    z = hi @ params["w2i"] + params["b2i"]
    z = z / jnp.maximum(jnp.linalg.norm(z, axis=1, keepdims=True), 1e-12)
    hc = jnp.maximum(h @ params["w1c"] + params["b1c"], 0.0)
    logits = hc @ params["w2c"] + params["b2c"]
    return z, jax.nn.softmax(logits, axis=1)


def init_params(key, hidden, feature_dim, class_num):
    ks = jax.random.split(key, 8)
    s1 = 1.0 / jnp.sqrt(hidden)
    return {
        "w1i": jax.random.normal(ks[0], (hidden, hidden), jnp.float32) * s1,
        "b1i": jax.random.normal(ks[1], (1, hidden), jnp.float32) * s1,
        "w2i": jax.random.normal(ks[2], (hidden, feature_dim), jnp.float32) * s1,
        "b2i": jax.random.normal(ks[3], (1, feature_dim), jnp.float32) * s1,
        "w1c": jax.random.normal(ks[4], (hidden, hidden), jnp.float32) * s1,
        "b1c": jax.random.normal(ks[5], (1, hidden), jnp.float32) * s1,
        "w2c": jax.random.normal(ks[6], (hidden, class_num), jnp.float32) * s1,
        "b2c": jax.random.normal(ks[7], (1, class_num), jnp.float32) * s1,
    }


if __name__ == "__main__":
    B, HIDDEN, FEATURE_DIM, CLASS_NUM = 8, 128, 32, 16

    key = jax.random.PRNGKey(0)
    k_h_i, k_h_j, k_params = jax.random.split(key, 3)

    # h_i / h_j play the role of the pooled BERT outputs (output[1]).
    h_i = jax.random.normal(k_h_i, (B, HIDDEN), jnp.float32)
    h_j = jax.random.normal(k_h_j, (B, HIDDEN), jnp.float32)
    params = init_params(k_params, HIDDEN, FEATURE_DIM, CLASS_NUM)
    fused = fuse_params(params)

    z_i, z_j, c_i, c_j = network_forward(h_i, h_j, fused,
                                         feature_dim=FEATURE_DIM, class_num=CLASS_NUM)
    jax.block_until_ready((z_i, z_j, c_i, c_j))

    # sanity check against a plain-JAX reference.
    # tolerance accounts for the EUP approx reciprocal / rsqrt (~1e-4 relative).
    z_ref_i, c_ref_i = _reference(h_i, params)
    z_ref_j, c_ref_j = _reference(h_j, params)
    assert z_i.shape == (B, FEATURE_DIM) and c_i.shape == (B, CLASS_NUM)
    assert z_j.shape == (B, FEATURE_DIM) and c_j.shape == (B, CLASS_NUM)
    assert jnp.allclose(z_i, z_ref_i, atol=2e-3, rtol=2e-3)
    assert jnp.allclose(z_j, z_ref_j, atol=2e-3, rtol=2e-3)
    assert jnp.allclose(c_i, c_ref_i, atol=2e-3, rtol=2e-3)
    assert jnp.allclose(c_j, c_ref_j, atol=2e-3, rtol=2e-3)

    print("KERNEL_OK")
</pallas_src>

<mosaic_0001>
module attributes {stable_mosaic.version = 11 : i64} {
  func.func @_fused_projector_kernel(%arg0: memref<16x128xf32, #tpu.memory_space<vmem>>, %arg1: memref<128x256xf32, #tpu.memory_space<vmem>>, %arg2: memref<1x256xf32, #tpu.memory_space<vmem>>, %arg3: memref<256x256xf32, #tpu.memory_space<vmem>>, %arg4: memref<1x256xf32, #tpu.memory_space<vmem>>, %arg5: memref<16x256xf32, #tpu.memory_space<vmem>>) attributes {dimension_semantics = [], scalar_prefetch = 0 : i64, scratch_operands = 0 : i64, tpu.core_type = #tpu.core_type<tc>} {
    %c0 = arith.constant 0 : index
    %c0_0 = arith.constant 0 : index
    %0 = vector.load %arg0[%c0, %c0_0] : memref<16x128xf32, #tpu.memory_space<vmem>>, vector<16x128xf32>
    %c0_1 = arith.constant 0 : index
    %c0_2 = arith.constant 0 : index
    %1 = vector.load %arg1[%c0_1, %c0_2] : memref<128x256xf32, #tpu.memory_space<vmem>>, vector<128x256xf32>
    %cst = arith.constant dense<0.000000e+00> : vector<16x256xf32>
    %2 = tpu.matmul %0, %1, %cst {dimension_numbers = #tpu.dot_dimension_numbers<[1], [0], [0], [1], [0, 0, 1, 1], [], []>} : vector<16x128xf32>, vector<128x256xf32>, vector<16x256xf32> -> vector<16x256xf32>
    %c0_3 = arith.constant 0 : index
    %c0_4 = arith.constant 0 : index
    %3 = vector.load %arg2[%c0_3, %c0_4] : memref<1x256xf32, #tpu.memory_space<vmem>>, vector<1x256xf32>
    %4 = vector.broadcast %3 : vector<1x256xf32> to vector<16x256xf32>
    %5 = arith.addf %2, %4 : vector<16x256xf32>
    %cst_5 = arith.constant 0.000000e+00 : f32
    %6 = vector.broadcast %cst_5 : f32 to vector<16x256xf32>
    %7 = arith.maximumf %5, %6 : vector<16x256xf32>
    %c0_6 = arith.constant 0 : index
    %c0_7 = arith.constant 0 : index
    %8 = vector.load %arg3[%c0_6, %c0_7] : memref<256x256xf32, #tpu.memory_space<vmem>>, vector<256x256xf32>
    %cst_8 = arith.constant dense<0.000000e+00> : vector<16x256xf32>
    %9 = tpu.matmul %7, %8, %cst_8 {dimension_numbers = #tpu.dot_dimension_numbers<[1], [0], [0], [1], [0, 0, 1, 1], [], []>} : vector<16x256xf32>, vector<256x256xf32>, vector<16x256xf32> -> vector<16x256xf32>
    %c0_9 = arith.constant 0 : index
    %c0_10 = arith.constant 0 : index
    %10 = vector.load %arg4[%c0_9, %c0_10] : memref<1x256xf32, #tpu.memory_space<vmem>>, vector<1x256xf32>
    %11 = vector.broadcast %10 : vector<1x256xf32> to vector<16x256xf32>
    %12 = arith.addf %9, %11 : vector<16x256xf32>
    %13 = vector.extract_strided_slice %12 {offsets = [0, 0], sizes = [16, 128], strides = [1, 1]} : vector<16x256xf32> to vector<16x128xf32>
    %14 = vector.extract_strided_slice %12 {offsets = [0, 128], sizes = [16, 128], strides = [1, 1]} : vector<16x256xf32> to vector<16x128xf32>
    %15 = arith.mulf %13, %13 : vector<16x128xf32>
    %cst_11 = arith.constant dense<0.000000e+00> : vector<16xf32>
    %16 = vector.multi_reduction <add>, %15, %cst_11 [1] : vector<16x128xf32> to vector<16xf32>
    %17 = vector.shape_cast %16 : vector<16xf32> to vector<16x1xf32>
    %cst_12 = arith.constant 1.000000e-24 : f32
    %18 = vector.broadcast %cst_12 : f32 to vector<16x1xf32>
    %19 = arith.maximumf %17, %18 : vector<16x1xf32>
    %20 = math.rsqrt %19 : vector<16x1xf32>
    %21 = vector.broadcast %20 : vector<16x1xf32> to vector<16x128xf32>
    %22 = arith.mulf %13, %21 : vector<16x128xf32>
    %cst_13 = arith.constant dense<0xFF800000> : vector<16xf32>
    %23 = vector.multi_reduction <maximumf>, %14, %cst_13 [1] : vector<16x128xf32> to vector<16xf32>
    %24 = vector.shape_cast %23 : vector<16xf32> to vector<16x1xf32>
    %25 = vector.broadcast %24 : vector<16x1xf32> to vector<16x128xf32>
    %26 = arith.subf %14, %25 : vector<16x128xf32>
    %27 = math.exp %26 : vector<16x128xf32>
    %cst_14 = arith.constant dense<0.000000e+00> : vector<16xf32>
    %28 = vector.multi_reduction <add>, %27, %cst_14 [1] : vector<16x128xf32> to vector<16xf32>
    %29 = vector.shape_cast %28 : vector<16xf32> to vector<16x1xf32>
    %30 = tpu.reciprocal %29 {approx = true} : vector<16x1xf32> -> vector<16x1xf32>
    %31 = vector.broadcast %30 : vector<16x1xf32> to vector<16x128xf32>
    %32 = arith.mulf %27, %31 : vector<16x128xf32>
    %c0_15 = arith.constant 0 : index
    %c0_16 = arith.constant 0 : index
    %33 = vector.load %arg5[%c0_15, %c0_16] : memref<16x256xf32, #tpu.memory_space<vmem>>, vector<16x128xf32>
    tpu.vector_store %arg5[%c0_15, %c0_16], %22 {strides = array<i32>} : memref<16x256xf32, #tpu.memory_space<vmem>>, vector<16x128xf32>,
    %c0_17 = arith.constant 0 : index
    %c128 = arith.constant 128 : index
    %34 = vector.load %arg5[%c0_17, %c128] : memref<16x256xf32, #tpu.memory_space<vmem>>, vector<16x128xf32>
    tpu.vector_store %arg5[%c0_17, %c128], %32 {strides = array<i32>} : memref<16x256xf32, #tpu.memory_space<vmem>>, vector<16x128xf32>,
    return
  }
}

</mosaic_0001>

<bundles_post_ra>
// kernel: network_forward.1
= control target key start
LH: loop header
LB: loop body
LE: loop exit
PB: predicated region body
PF: predicated region fallthrough
CT: control target
= control target key end

     0   :  { %10 = vsyncpa [#allocation3], 0  ;;  %s614_s0 = inlined_call_operand.vmem [shape: f32[16,128], index: 0, kind: input, shape index: {}]   ;;  %s615_s1 = inlined_call_operand.hbm [shape: f32[128,256], index: 1, kind: input, shape index: {}]   ;;  %s616_s2 = inlined_call_operand.vmem [shape: f32[1,256], index: 2, kind: input, shape index: {}]   ;;  %s617_s3 = inlined_call_operand.hbm [shape: f32[256,256], index: 3, kind: input, shape index: {}]   ;;  %s618_s4 = inlined_call_operand.vmem [shape: f32[1,256], index: 4, kind: input, shape index: {}]   ;;  %s619_s5 = inlined_call_operand.vmem [shape: f32[16,256], index: 5, kind: output, shape index: {}]  }
   0x1   :  { %11 = vsyncpa [#allocation5], 0  ;;  %s529_s18 = smov [#allocation2]   ;;  %s481_s22 = scalar_lea.hbm %s615_s1, 4096 }
   0x2   :  { %s19_s19 = sshll.u32 %s529_s18, 4  ;;  %p482_p0 = scmp.ne.s32.totalorder %s615_s1, %s481_s22  ;;  %s20_s19 = int_to_ptr.vmem [resolvable:$true] %s19_s19 }
   0x3   :  { %p485_p1 = scmp.lt.u32.totalorder %s481_s22, %s615_s1 }
   0x5   :  { %p487_p2 = pnand %p485_p1, %p482_p0 }
   0x7   :  { %490 = shalt.err (!%p487_p2)
}
   0x8   :  { %s491_s27 = scalar_lea.vmem %s20_s19, 4096  ;;  %p496_p4 = scmp.lt.s32.totalorder %s20_s19, %s20_s19 }
   0x9   :  { %p492_p3 = scmp.ne.s32.totalorder %s20_s19, %s491_s27  ;;  %p497_p5 = scmp.lt.s32.totalorder %s491_s27, %s491_s27 }
   0xb   :  { %p498_p6 = por %p497_p5, %p496_p4 }
   0xd   :  { %p499_p7 = pnand %p498_p6, %p492_p3 }
   0xf   :  { %502 = shalt.err (!%p499_p7)
}
  0x10   :  { %s530_s28 = smov 256   ;;  %s531_s29 = smov 16  }
  0x11   :  { %25 = dma.hbm_to_vmem [thread:$0]  %s615_s1, 4096, %s20_s19, [#allocation3], %s530_s28, %s530_s28, %s531_s29  }
  0x12   :  { %s532_s7 = smov [#allocation4]   ;;  %s503_s11 = scalar_lea.hbm %s617_s3, 8192 }
  0x13   :  { %s33_s8 = sshll.u32 %s532_s7, 4  ;;  %p504_p8 = scmp.ne.s32.totalorder %s617_s3, %s503_s11  ;;  %s34_s8 = int_to_ptr.vmem [resolvable:$true] %s33_s8 }
  0x14   :  { %p507_p9 = scmp.lt.u32.totalorder %s503_s11, %s617_s3 }
  0x16   :  { %p509_p10 = pnand %p507_p9, %p504_p8 }
  0x18   :  { %512 = shalt.err (!%p509_p10)
}
  0x19   :  { %s513_s16 = scalar_lea.vmem %s34_s8, 8192  ;;  %p518_p12 = scmp.lt.s32.totalorder %s34_s8, %s34_s8 }
  0x1a   :  { %p514_p11 = scmp.ne.s32.totalorder %s34_s8, %s513_s16  ;;  %p519_p13 = scmp.lt.s32.totalorder %s513_s16, %s513_s16 }
  0x1c   :  { %p520_p0 = por %p519_p13, %p518_p12 }
  0x1e   :  { %p521_p1 = pnand %p520_p0, %p514_p11 }
  0x20   :  { %524 = shalt.err (!%p521_p1)
}
  0x21   :  { %39 = dma.hbm_to_vmem [thread:$0]  %s617_s3, 8192, %s34_s8, [#allocation5], %s530_s28, %s530_s28, %s531_s29  }
  0x22   :  { %525 = dma.done.wait [#allocation3], 4096  }
  0x23   :  { %526 = vsyncadd [#allocation3], 4294963200 }
  0x24   :  { %527 = dma.done.wait [#allocation5], 8192  }
  0x25   :  { %528 = vsyncadd [#allocation5], 4294959104  ;;  %v533_v0 = vmov 0.0   ;;  %v51_v1 = vld [vmem:[#allocation2 + $0x8] sm:$0xff]  ;;  %v53_v2 = vld [vmem:[#allocation2 + $0x18] sm:$0xff] }
  0x26   :  { %158 = vmatprep.mubr.f32.mxu0 %v533_v0  ;;  %v50_v3 = vld [vmem:[#allocation2] sm:$0xff]  ;;  %v368_v4 = vpack.c.bf16 %v53_v2, %v51_v1  ;;  %v52_v5 = vld [vmem:[#allocation2 + $0x10] sm:$0xff]  ;;  %v55_v6 = vld [vmem:[#allocation2 + $0x28] sm:$0xff] }
  0x27   :  { %v57_v7 = vld [vmem:[#allocation2 + $0x38] sm:$0xff]  ;;  %v370_v8 = vpack.c.bf16 %v52_v5, %v50_v3  ;;  %v54_v10 = vld [vmem:[#allocation2 + $0x20] sm:$0xff]  ;;  %v56_v11 = vld [vmem:[#allocation2 + $0x30] sm:$0xff] }
  0x28   :  { %v372_v9 = vpack.c.bf16 %v57_v7, %v55_v6  ;;  %v59_v12 = vld [vmem:[#allocation2 + $0x48] sm:$0xff]  ;;  %369 = vmatprep.subr.bf16.mxu0 %v368_v4  ;;  %v61_v13 = vld [vmem:[#allocation2 + $0x58] sm:$0xff]  ;;  %v374_v14 = vpack.c.bf16 %v56_v11, %v54_v10  ;;  %v58_v16 = vld [vmem:[#allocation2 + $0x40] sm:$0xff] }
  0x29   :  { %371 = vmatpush1.bf16.msra.mxu0 %v370_v8  ;;  %v376_v15 = vpack.c.bf16 %v61_v13, %v59_v12  ;;  %v60_v17 = vld [vmem:[#allocation2 + $0x50] sm:$0xff]  ;;  %v63_v18 = vld [vmem:[#allocation2 + $0x68] sm:$0xff]  ;;  %v65_v19 = vld [vmem:[#allocation2 + $0x78] sm:$0xff] }
  0x2a   :  { %373 = vmatprep.subr.bf16.mxu0 %v372_v9  ;;  %v378_v20 = vpack.c.bf16 %v60_v17, %v58_v16  ;;  %v380_v21 = vpack.c.bf16 %v65_v19, %v63_v18  ;;  %v62_v22 = vld [vmem:[#allocation2 + $0x60] sm:$0xff]  ;;  %v64_v23 = vld [vmem:[#allocation2 + $0x70] sm:$0xff]  ;;  %v67_v24 = vld [vmem:[#allocation2 + $0x88] sm:$0xff] }
  0x2b   :  { %v69_v25 = vld [vmem:[#allocation2 + $0x98] sm:$0xff]  ;;  %v66_v26 = vld [vmem:[#allocation2 + $0x80] sm:$0xff]  ;;  %v68_v27 = vld [vmem:[#allocation2 + $0x90] sm:$0xff]  ;;  %v382_v30 = vpack.c.bf16 %v64_v23, %v62_v22 }
  0x2c   :  { %v176_v28 = vld [vmem:[#allocation4 + $0x8] sm:$0xff]  ;;  %v178_v29 = vld [vmem:[#allocation4 + $0x18] sm:$0xff]  ;;  %v175_v33 = vld [vmem:[#allocation4] sm:$0xff]  ;;  %v384_v36 = vpack.c.bf16 %v69_v25, %v67_v24  ;;  %v386_v46 = vpack.c.bf16 %v68_v27, %v66_v26 }
  0x2d   :  { %375 = vmatpush1.bf16.msra.mxu0 %v374_v14  ;;  %v71_v31 = vld [vmem:[#allocation2 + $0xa8] sm:$0xff]  ;;  %v400_v32 = vpack.c.bf16 %v178_v29, %v176_v28  ;;  %v177_v34 = vld [vmem:[#allocation4 + $0x10] sm:$0xff]  ;;  %v182_v38 = vld [vmem:[#allocation4 + $0x38] sm:$0xff] }
  0x2e   :  { %377 = vmatprep.subr.bf16.mxu0 %v376_v15  ;;  %v180_v35 = vld [vmem:[#allocation4 + $0x28] sm:$0xff]  ;;  %v402_v37 = vpack.c.bf16 %v177_v34, %v175_v33  ;;  %v179_v39 = vld [vmem:[#allocation4 + $0x20] sm:$0xff]  ;;  %v181_v40 = vld [vmem:[#allocation4 + $0x30] sm:$0xff] }
  0x2f   :  { %v73_v41 = vld [vmem:[#allocation2 + $0xb8] sm:$0xff]  ;;  %401 = vmatprep.subr.bf16.mxu1 %v400_v32  ;;  %v404_v42 = vpack.c.bf16 %v182_v38, %v180_v35  ;;  %v184_v43 = vld [vmem:[#allocation4 + $0x48] sm:$0xff]  ;;  %v406_v45 = vpack.c.bf16 %v181_v40, %v179_v39  ;;  %v70_v47 = vld [vmem:[#allocation2 + $0xa0] sm:$0xff] }
  0x30   :  { %v186_v44 = vld [vmem:[#allocation4 + $0x58] sm:$0xff]  ;;  %403 = vmatpush1.bf16.msra.mxu1 %v402_v37  ;;  %v183_v49 = vld [vmem:[#allocation4 + $0x40] sm:$0xff]  ;;  %v185_v50 = vld [vmem:[#allocation4 + $0x50] sm:$0xff]  ;;  %v388_v51 = vpack.c.bf16 %v73_v41, %v71_v31 }
  0x31   :  { %379 = vmatpush1.bf16.msra.mxu0 %v378_v20  ;;  %405 = vmatprep.subr.bf16.mxu1 %v404_v42  ;;  %v408_v48 = vpack.c.bf16 %v186_v44, %v184_v43  ;;  %v72_v52 = vld [vmem:[#allocation2 + $0xb0] sm:$0xff]  ;;  %v188_v53 = vld [vmem:[#allocation4 + $0x68] sm:$0xff]  ;;  %v190_v54 = vld [vmem:[#allocation4 + $0x78] sm:$0xff]  ;;  %v410_v57 = vpack.c.bf16 %v185_v50, %v183_v49 }
  0x32   :  { %381 = vmatprep.subr.bf16.mxu0 %v380_v21  ;;  %v75_v55 = vld [vmem:[#allocation2 + $0xc8] sm:$0xff]  ;;  %v77_v56 = vld [vmem:[#allocation2 + $0xd8] sm:$0xff]  ;;  %v390_v58 = vpack.c.bf16 %v72_v52, %v70_v47  ;;  %v74_v59 = vld [vmem:[#allocation2 + $0xc0] sm:$0xff]  ;;  %v412_v60 = vpack.c.bf16 %v190_v54, %v188_v53 }
  0x33   :  { %v187_v61 = vld [vmem:[#allocation4 + $0x60] sm:$0xff]  ;;  %v189_v62 = vld [vmem:[#allocation4 + $0x70] sm:$0xff]  ;;  %v392_v63 = vpack.c.bf16 %v77_v56, %v75_v55  ;;  %v192_v2 = vld [vmem:[#allocation4 + $0x88] sm:$0xff] }
  0x34   :  { %407 = vmatpush1.bf16.msra.mxu1 %v406_v45  ;;  %v76_v1 = vld [vmem:[#allocation2 + $0xd0] sm:$0xff]  ;;  %v194_v3 = vld [vmem:[#allocation4 + $0x98] sm:$0xff]  ;;  %v79_v4 = vld [vmem:[#allocation2 + $0xe8] sm:$0xff]  ;;  %v414_v6 = vpack.c.bf16 %v189_v62, %v187_v61 }
  0x35   :  { %383 = vmatpush1.bf16.msra.mxu0 %v382_v30  ;;  %409 = vmatprep.subr.bf16.mxu1 %v408_v48  ;;  %v81_v5 = vld [vmem:[#allocation2 + $0xf8] sm:$0xff]  ;;  %v394_v7 = vpack.c.bf16 %v76_v1, %v74_v59  ;;  %v78_v8 = vld [vmem:[#allocation2 + $0xe0] sm:$0xff]  ;;  %v416_v9 = vpack.c.bf16 %v194_v3, %v192_v2  ;;  %v193_v11 = vld [vmem:[#allocation4 + $0x90] sm:$0xff] }
  0x36   :  { %385 = vmatprep.subr.bf16.mxu0 %v384_v36  ;;  %v191_v10 = vld [vmem:[#allocation4 + $0x80] sm:$0xff]  ;;  %v396_v12 = vpack.c.bf16 %v81_v5, %v79_v4  ;;  %v80_v13 = vld [vmem:[#allocation2 + $0xf0] sm:$0xff]  ;;  %v196_v14 = vld [vmem:[#allocation4 + $0xa8] sm:$0xff] }
  0x37   :  { %v198_v15 = vld [vmem:[#allocation4 + $0xb8] sm:$0xff]  ;;  %v418_v16 = vpack.c.bf16 %v193_v11, %v191_v10  ;;  %v398_v17 = vpack.c.bf16 %v80_v13, %v78_v8  ;;  %v195_v19 = vld [vmem:[#allocation4 + $0xa0] sm:$0xff]  ;;  %v197_v20 = vld [vmem:[#allocation4 + $0xb0] sm:$0xff] }
  0x38   :  { %411 = vmatpush1.bf16.msra.mxu1 %v410_v57  ;;  %v420_v18 = vpack.c.bf16 %v198_v15, %v196_v14  ;;  %v200_v21 = vld [vmem:[#allocation4 + $0xc8] sm:$0xff]  ;;  %v202_v22 = vld [vmem:[#allocation4 + $0xd8] sm:$0xff]  ;;  %v422_v23 = vpack.c.bf16 %v197_v20, %v195_v19  ;;  %v48_v24 = vld [vmem:[%s614_s0] sm:$0xff]  ;;  %v84_v20 = vlaneseq }
  0x39   :  { %387 = vmatpush1.bf16.msra.mxu0 %v386_v46  ;;  %413 = vmatprep.subr.bf16.mxu1 %v412_v60  ;;  %v424_v25 = vpack.c.bf16 %v202_v22, %v200_v21  ;;  %v199_v26 = vld [vmem:[#allocation4 + $0xc0] sm:$0xff]  ;;  %v201_v27 = vld [vmem:[#allocation4 + $0xd0] sm:$0xff]  ;;  %v204_v28 = vld [vmem:[#allocation4 + $0xe8] sm:$0xff] }
  0x3a   :  { %389 = vmatprep.subr.bf16.mxu0 %v388_v51  ;;  %v206_v29 = vld [vmem:[#allocation4 + $0xf8] sm:$0xff]  ;;  %v426_v30 = vpack.c.bf16 %v201_v27, %v199_v26  ;;  %v49_v31 = vld [vmem:[%s614_s0 + $0x8] sm:$0xff]  ;;  %v203_v33 = vld [vmem:[#allocation4 + $0xe0] sm:$0xff]  ;;  %v85_v21 = vshrl.u32 %v84_v20, 7 }
  0x3b   :  { %v428_v32 = vpack.c.bf16 %v206_v29, %v204_v28  ;;  %v205_v34 = vld [vmem:[#allocation4 + $0xf0] sm:$0xff]  ;;  %v208_v35 = vld [vmem:[#allocation4 + $0x108] sm:$0xff]  ;;  %v210_v36 = vld [vmem:[#allocation4 + $0x118] sm:$0xff] }
  0x3c   :  { %415 = vmatpush1.bf16.msra.mxu1 %v414_v6  ;;  %v430_v37 = vpack.c.bf16 %v205_v34, %v203_v33  ;;  %v432_v38 = vpack.c.bf16 %v210_v36, %v208_v35  ;;  %v207_v39 = vld [vmem:[#allocation4 + $0x100] sm:$0xff]  ;;  %v209_v40 = vld [vmem:[#allocation4 + $0x110] sm:$0xff]  ;;  %v212_v41 = vld [vmem:[#allocation4 + $0x128] sm:$0xff]  ;;  %v86_v22 = vsub.s32 0, %v85_v21 }
  0x3d   :  { %391 = vmatpush1.bf16.msra.mxu0 %v390_v58  ;;  %417 = vmatprep.subr.bf16.mxu1 %v416_v9  ;;  %v214_v42 = vld [vmem:[#allocation4 + $0x138] sm:$0xff]  ;;  %v211_v44 = vld [vmem:[#allocation4 + $0x120] sm:$0xff]  ;;  %v213_v45 = vld [vmem:[#allocation4 + $0x130] sm:$0xff] }
  0x3e   :  { %393 = vmatprep.subr.bf16.mxu0 %v392_v63  ;;  %v436_v43 = vpack.c.bf16 %v214_v42, %v212_v41  ;;  %v216_v46 = vld [vmem:[#allocation4 + $0x148] sm:$0xff]  ;;  %v218_v47 = vld [vmem:[#allocation4 + $0x158] sm:$0xff]  ;;  %v438_v48 = vpack.c.bf16 %v213_v45, %v211_v44  ;;  %v215_v50 = vld [vmem:[#allocation4 + $0x140] sm:$0xff] }
  0x3f   :  { %v440_v49 = vpack.c.bf16 %v218_v47, %v216_v46  ;;  %v217_v51 = vld [vmem:[#allocation4 + $0x150] sm:$0xff]  ;;  %v220_v52 = vld [vmem:[#allocation4 + $0x168] sm:$0xff]  ;;  %v222_v53 = vld [vmem:[#allocation4 + $0x178] sm:$0xff] }
  0x40   :  { %419 = vmatpush1.bf16.msra.mxu1 %v418_v16  ;;  %v442_v54 = vpack.c.bf16 %v217_v51, %v215_v50  ;;  %v444_v55 = vpack.c.bf16 %v222_v53, %v220_v52  ;;  %v219_v56 = vld [vmem:[#allocation4 + $0x160] sm:$0xff]  ;;  %v221_v57 = vld [vmem:[#allocation4 + $0x170] sm:$0xff]  ;;  %v224_v58 = vld [vmem:[#allocation4 + $0x188] sm:$0xff] }
  0x41   :  { %395 = vmatpush1.bf16.msra.mxu0 %v394_v7  ;;  %421 = vmatprep.subr.bf16.mxu1 %v420_v18  ;;  %v226_v59 = vld [vmem:[#allocation4 + $0x198] sm:$0xff]  ;;  %v446_v60 = vpack.c.bf16 %v221_v57, %v219_v56  ;;  %v223_v62 = vld [vmem:[#allocation4 + $0x180] sm:$0xff]  ;;  %v225_v63 = vld [vmem:[#allocation4 + $0x190] sm:$0xff] }
  0x42   :  { %397 = vmatprep.subr.bf16.mxu0 %v396_v12  ;;  %v448_v61 = vpack.c.bf16 %v226_v59, %v224_v58  ;;  %v228_v1 = vld [vmem:[#allocation4 + $0x1a8] sm:$0xff]  ;;  %v230_v2 = vld [vmem:[#allocation4 + $0x1b8] sm:$0xff]  ;;  %v450_v3 = vpack.c.bf16 %v225_v63, %v223_v62  ;;  %v227_v5 = vld [vmem:[#allocation4 + $0x1a0] sm:$0xff] }
  0x43   :  { %v452_v4 = vpack.c.bf16 %v230_v2, %v228_v1  ;;  %v229_v6 = vld [vmem:[#allocation4 + $0x1b0] sm:$0xff]  ;;  %v232_v7 = vld [vmem:[#allocation4 + $0x1c8] sm:$0xff]  ;;  %v234_v8 = vld [vmem:[#allocation4 + $0x1d8] sm:$0xff] }
  0x44   :  { %423 = vmatpush1.bf16.msra.mxu1 %v422_v23  ;;  %v454_v9 = vpack.c.bf16 %v229_v6, %v227_v5  ;;  %v456_v10 = vpack.c.bf16 %v234_v8, %v232_v7  ;;  %v231_v11 = vld [vmem:[#allocation4 + $0x1c0] sm:$0xff]  ;;  %v233_v12 = vld [vmem:[#allocation4 + $0x1d0] sm:$0xff]  ;;  %v236_v14 = vld [vmem:[#allocation4 + $0x1e8] sm:$0xff] }
  0x45   :  { %399 = vmatpush1.bf16.msra.mxu0 %v398_v17  ;;  %425 = vmatprep.subr.bf16.mxu1 %v424_v25  ;;  %v458_v13 = vpack.c.bf16 %v233_v12, %v231_v11  ;;  %v238_v15 = vld [vmem:[#allocation4 + $0x1f8] sm:$0xff]  ;;  %v235_v17 = vld [vmem:[#allocation4 + $0x1e0] sm:$0xff]  ;;  %v237_v18 = vld [vmem:[#allocation4 + $0x1f0] sm:$0xff] }
  0x46   :  { %v460_v16 = vpack.c.bf16 %v238_v15, %v236_v14  ;;  %v462_v19 = vpack.c.bf16 %v237_v18, %v235_v17  ;;  %v82_v23 = vld [vmem:[%s616_s2] sm:$0x3] }
  0x47   :  { %v87_v25 = vrot.slane %v82_v23, %v86_v22 }
  0x48   :  { %159 = vmatmul.mubr.f32.vlgmr.msra.gmra.mrb[0].mxu0 %v48_v24  ;;  %427 = vmatpush1.bf16.msra.mxu1 %v426_v30  ;;  %v90_v24 = vsub.s32 1, %v85_v21 }
  0x49   :  { %164 = vmatprep.mubr.f32.mxu0 %v533_v0  ;;  %429 = vmatprep.subr.bf16.mxu1 %v428_v32  ;;  %v434_v0 = vpack.c.bf16 %v209_v40, %v207_v39  ;;  %v239_v39 = vld [vmem:[%s618_s4] sm:$0x3] }
  0x4a   :  { %v91_v26 = vrot.slane %v82_v23, %v90_v24  ;;  %v244_v40 = vrot.slane %v239_v39, %v86_v22  ;;  %v248_v41 = vrot.slane %v239_v39, %v90_v24 }
  0x4c   :  { %165 = vmatmul.mubr.f32.gmra.mrb[2].mxu0 %v49_v31  ;;  %431 = vmatpush1.bf16.msra.mxu1 %v430_v37 }
  0x4d   :  { %433 = vmatprep.subr.bf16.mxu1 %v432_v38 }
  0x50   :  { %435 = vmatpush1.bf16.msra.mxu1 %v434_v0 }
  0x51   :  { %437 = vmatprep.subr.bf16.mxu1 %v436_v43 }
  0x54   :  { %439 = vmatpush1.bf16.msra.mxu1 %v438_v48 }
  0x55   :  { %441 = vmatprep.subr.bf16.mxu1 %v440_v49 }
  0x58   :  { %443 = vmatpush1.bf16.msra.mxu1 %v442_v54 }
  0x59   :  { %445 = vmatprep.subr.bf16.mxu1 %v444_v55 }
  0x5c   :  { %447 = vmatpush1.bf16.msra.mxu1 %v446_v60 }
  0x5d   :  { %449 = vmatprep.subr.bf16.mxu1 %v448_v61 }
  0x60   :  { %451 = vmatpush1.bf16.msra.mxu1 %v450_v3 }
  0x61   :  { %453 = vmatprep.subr.bf16.mxu1 %v452_v4 }
  0x64   :  { %455 = vmatpush1.bf16.msra.mxu1 %v454_v9 }
  0x65   :  { %457 = vmatprep.subr.bf16.mxu1 %v456_v10 }
  0x68   :  { %459 = vmatpush1.bf16.msra.mxu1 %v458_v13 }
  0x69   :  { %461 = vmatprep.subr.bf16.mxu1 %v460_v16 }
  0x6c   :  { %463 = vmatpush1.bf16.msra.mxu1 %v462_v19 }
 0x11b   :  { %v160_v27 = vpop.f32.mrb[0].mxu0 }
 0x11c   :  { %v161_v28 = vadd.f32 %v160_v27, %v87_v25  ;;  %v162_v29 = vpop.f32.mrb[1].mxu0 }
 0x11d   :  { %v163_v30 = vadd.f32 %v162_v29, %v91_v26 }
 0x11e   :  { %v171_v33 = vmax.f32 %v161_v28, 0.0 }
 0x11f   :  { %v166_v31 = vpop.f32.mrb[2].mxu0  ;;  %v172_v32 = vmax.f32 %v163_v30, 0.0 }
 0x120   :  { %v167_v34 = vadd.f32 %v166_v31, %v87_v25  ;;  %v168_v35 = vpop.f32.mrb[3].mxu0 }
 0x121   :  { %v169_v36 = vadd.f32 %v168_v35, %v91_v26  ;;  %315 = vmatprep.mubr.f32.mxu1 %v172_v32 }
 0x122   :  { %316 = vmatmul.mubr.f32.vlgmr.msra.gmra.mrb[0].mxu1 %v171_v33  ;;  %v173_v38 = vmax.f32 %v167_v34, 0.0 }
 0x123   :  { %v174_v37 = vmax.f32 %v169_v36, 0.0 }
 0x125   :  { %321 = vmatprep.mubr.f32.mxu1 %v174_v37 }
 0x126   :  { %322 = vmatmul.mubr.f32.gmra.mrb[2].mxu1 %v173_v38 }
 0x1f5   :  { %v317_v42 = vpop.f32.mrb[0].mxu1 }
 0x1f6   :  { %v318_v0 = vadd.f32 %v317_v42, %v244_v40  ;;  %v319_v43 = vpop.f32.mrb[1].mxu1 }
 0x1f7   :  { %v320_v44 = vadd.f32 %v319_v43, %v248_v41 }
 0x1f8   :  { %v328_v45 = vmul.f32 %v318_v0, %v318_v0 }
 0x1f9   :  { %v323_v46 = vpop.f32.mrb[2].mxu1  ;;  %340 = vmax.xlane.f32.xlu0 %v320_v44 }
 0x1fa   :  { %v324_v47 = vadd.f32 %v323_v46, %v244_v40  ;;  %v325_v48 = vpop.f32.mrb[3].mxu1  ;;  %330 = vadd.xlane.f32.xlu1 %v328_v45 }
 0x1fb   :  { %v326_v49 = vadd.f32 %v325_v48, %v248_v41 }
 0x1fc   :  { %v329_v50 = vmul.f32 %v324_v47, %v324_v47 }
 0x1fd   :  { %342 = vmax.xlane.f32.xlu0 %v326_v49 }
 0x1fe   :  { %332 = vadd.xlane.f32.xlu1 %v329_v50 }
 0x286   :  { %v341_v51 = vpop.xlane.xlu0 %340 }
 0x287   :  { %v344_v52 = vsub.f32 %v320_v44, %v341_v51  ;;  %v331_v53 = vpop.xlane.xlu1 %330 }
 0x288   :  { %v334_v54 = vmax.f32 %v331_v53, 1e-24 }
 0x289   :  { %v346_v55 = vmul.f32 1.442695, %v344_v52 }
 0x28a   :  { %469 = vrsqrt.f32 %v334_v54  ;;  %v343_v56 = vpop.xlane.xlu0 %342 }
 0x28b   :  { %471 = vpow2.f32 %v346_v55  ;;  %v345_v57 = vsub.f32 %v326_v49, %v343_v56  ;;  %v333_v58 = vpop.xlane.xlu1 %332 }
 0x28c   :  { %v335_v59 = vmax.f32 %v333_v58, 1e-24 }
 0x28d   :  { %v348_v60 = vmul.f32 1.442695, %v345_v57 }
 0x28e   :  { %473 = vrsqrt.f32 %v335_v59 }
 0x28f   :  { %475 = vpow2.f32 %v348_v60 }
 0x294   :  { %v470_v61 = vpop.eup %469 }
 0x295   :  { %v472_v62 = vpop.eup %471  ;;  %v338_v63 = vmul.f32 %v470_v61, %v318_v0 }
 0x296   :  { %350 = vadd.xlane.f32.xlu0 %v472_v62 }
 0x297   :  { %358 = vst [vmem:[%s619_s5] sm:$0xff] %v338_v63 }
 0x298   :  { %v474_v1 = vpop.eup %473 }
 0x299   :  { %v476_v2 = vpop.eup %475  ;;  %v339_v3 = vmul.f32 %v474_v1, %v324_v47 }
 0x29a   :  { %352 = vadd.xlane.f32.xlu1 %v476_v2 }
 0x29b   :  { %359 = vst [vmem:[%s619_s5 + $0x10] sm:$0xff] %v339_v3 }
 0x323   :  { %v351_v4 = vpop.xlane.xlu0 %350 }
 0x324   :  { %477 = vrcp.f32 %v351_v4 }
 0x327   :  { %v353_v5 = vpop.xlane.xlu1 %352 }
 0x328   :  { %479 = vrcp.f32 %v353_v5 }
 0x32e   :  { %v478_v6 = vpop.eup %477 }
 0x32f   :  { %v356_v7 = vmul.f32 %v478_v6, %v472_v62 }
 0x331   :  { %360 = vst [vmem:[%s619_s5 + $0x8] sm:$0xff] %v356_v7 }
 0x332   :  { %v480_v8 = vpop.eup %479 }
 0x333   :  { %v357_v9 = vmul.f32 %v480_v8, %v476_v2 }
 0x335   :  { %361 = vst [vmem:[%s619_s5 + $0x18] sm:$0xff] %v357_v9 }
 0x336   :  { %366 = vsyncpa [#allocation3], 1 }
 0x337   :  { %367 = vsyncpa [#allocation5], 1 }

</bundles_post_ra>
